<compile_context>
chip_gen: v7x
topology: tpu7x:2x2x1
jax: 0.10.0
libtpu: 0.0.40
codegen_flags: <defaults>
</compile_context>

<pallas_src>
import functools

import jax
import jax.numpy as jnp
from jax.experimental import pallas as pl
from jax.experimental.pallas import tpu as pltpu


def _round_up(a: int, b: int) -> int:
    return (a + b - 1) // b * b


def _gap_single_kernel(x_ref, o_ref, *, inv_hw):
    # HW fits in one lane block: one pass, one cross-lane reduce per row tile.
    x = x_ref[...].astype(jnp.float32)
    o_ref[...] = (jnp.sum(x, axis=1, keepdims=True) * inv_hw).astype(o_ref.dtype)


def _gap_reduce_kernel(x_ref, o_ref, acc_ref, *, inv_hw, tk, rem):
    # Multi-step reduction over HW with a lane-dense (tm, 128) f32 accumulator.
    j = pl.program_id(1)
    nk = pl.num_programs(1)
    g = tk // 128  # tk is a multiple of 128 on this path

    @pl.when(j == 0)
    def _():
        acc_ref[...] = jnp.zeros_like(acc_ref)

    def _accumulate(mask_cols):
        acc = acc_ref[...]
        for lg in range(g):
            xs = x_ref[:, lg * 128:(lg + 1) * 128].astype(jnp.float32)
            if mask_cols:
                col = lg * 128 + jax.lax.broadcasted_iota(jnp.int32, xs.shape, 1)
                xs = jnp.where(col < rem, xs, 0.0)
            acc = acc + xs
        acc_ref[...] = acc

    if rem is not None:
        # Mask only the ragged last reduction block; keep earlier blocks at
        # ~1 VALU add per element.
        @pl.when(j < nk - 1)
        def _():
            _accumulate(False)

        @pl.when(j == nk - 1)
        def _():
            _accumulate(True)
    else:
        _accumulate(False)

    @pl.when(j == nk - 1)
    def _():
        # Single cross-lane (XLU) reduce + scale + narrow store per row tile.
        total = jnp.sum(acc_ref[...], axis=1, keepdims=True)
        o_ref[...] = (total * inv_hw).astype(o_ref.dtype)


def global_avg_pool2d(x: jax.Array) -> jax.Array:
    """GlobalAvgPool2d: (N, C, H, W) -> (N, C), mean over H and W."""
    N, C, H, W = x.shape
    R = N * C
    HW = H * W
    inv_hw = 1.0 / HW

    itemsize = jnp.dtype(x.dtype).itemsize
    # Sublane packing: f32 -> 8 rows/vreg, bf16 -> 16, int8/fp8 -> 32.
    sub = {4: 8, 2: 16, 1: 32}.get(itemsize, 8)

    # Reduction (lane) tile: full HW when it fits; otherwise a *balanced*
    # multiple-of-128 tile so the last block is never a tiny sliver.
    LANE_TILE_MAX = 8192
    if HW <= LANE_TILE_MAX:
        tk, nk = HW, 1
    else:
        nkr = pl.cdiv(HW, LANE_TILE_MAX)
        tk = _round_up(pl.cdiv(HW, nkr), 128)
        nk = pl.cdiv(HW, tk)

    # Row tile: ~8 MiB input blocks, budgeted with 128-lane padding; keep
    # total live VMEM (2x input buf + 2x lane-padded output buf + acc) under
    # ~24 MiB so it is safe on v7x's 64 MiB VMEM.
    tk_padded = _round_up(tk, 128)
    TARGET_BLOCK_BYTES = 8 * 1024 * 1024
    tm = max(sub, (TARGET_BLOCK_BYTES // (tk_padded * itemsize)) // sub * sub)
    tm = min(tm, _round_up(R, sub))
    per_row_bytes = (2 * tk_padded * itemsize        # double-buffered input
                     + 2 * 128 * itemsize            # double-buffered (.,1) output (lane-padded)
                     + (128 * 4 if nk > 1 else 0))   # f32 accumulator
    VMEM_LIVE_BUDGET = 24 * 1024 * 1024
    tm = min(tm, max(sub, (VMEM_LIVE_BUDGET // per_row_bytes) // sub * sub))

    # Megacore: keep the "parallel" row axis at >= 2 (even when possible)
    # tiles so both v7x TensorCores get work.
    nr = pl.cdiv(R, tm)
    if R > sub and nr == 1:
        tm = max(sub, _round_up(pl.cdiv(R, 2), sub))
        nr = pl.cdiv(R, tm)
    if nr > 1 and nr % 2 == 1:
        tm_even = max(sub, _round_up(pl.cdiv(R, nr + 1), sub))
        if pl.cdiv(R, tm_even) % 2 == 0:
            tm = tm_even
            nr = pl.cdiv(R, tm)

    block_bytes = tm * tk_padded * itemsize
    vmem_limit = int(min(48 * 1024 * 1024,
                         max(32 * 1024 * 1024, 2 * block_bytes + (8 << 20))))

    x2 = x.reshape(R, HW)  # contiguous view, no data movement

    if nk == 1:
        out = pl.pallas_call(
            functools.partial(_gap_single_kernel, inv_hw=inv_hw),
            out_shape=jax.ShapeDtypeStruct((R, 1), x.dtype),
            grid_spec=pltpu.PrefetchScalarGridSpec(
                num_scalar_prefetch=0,
                grid=(nr,),
                in_specs=[pl.BlockSpec((tm, tk), lambda i: (i, 0))],
                out_specs=pl.BlockSpec((tm, 1), lambda i: (i, 0)),
            ),
            compiler_params=pltpu.CompilerParams(
                dimension_semantics=("parallel",),
                vmem_limit_bytes=vmem_limit,
            ),
        )(x2)
    else:
        rem = HW - (nk - 1) * tk
        rem = None if rem == tk else rem  # None -> no ragged last block
        out = pl.pallas_call(
            functools.partial(_gap_reduce_kernel, inv_hw=inv_hw, tk=tk, rem=rem),
            out_shape=jax.ShapeDtypeStruct((R, 1), x.dtype),
            grid_spec=pltpu.PrefetchScalarGridSpec(
                num_scalar_prefetch=0,
                grid=(nr, nk),
                in_specs=[pl.BlockSpec((tm, tk), lambda i, j: (i, j))],
                out_specs=pl.BlockSpec((tm, 1), lambda i, j: (i, 0)),
                scratch_shapes=[pltpu.VMEM((tm, 128), jnp.float32)],
            ),
            compiler_params=pltpu.CompilerParams(
                dimension_semantics=("parallel", "arbitrary"),
                vmem_limit_bytes=vmem_limit,
            ),
        )(x2)

    return out.reshape(N, C)


def _global_avg_pool2d_ref(x):
    return jnp.mean(x.astype(jnp.float32), axis=(2, 3)).astype(x.dtype)


if __name__ == "__main__":
    key = jax.random.PRNGKey(0)
    # NCHW, matching the PyTorch module's expected input.
    x = jax.random.normal(key, (2, 4, 16, 16), dtype=jnp.float32) * 3.0

    y = global_avg_pool2d(x)
    y = jax.block_until_ready(y)

    y_ref = _global_avg_pool2d_ref(x)
    assert y.shape == (2, 4) and y.dtype == x.dtype
    assert jnp.allclose(y, y_ref, atol=1e-5, rtol=1e-5), "mismatch vs reference"

    print("KERNEL_OK")
</pallas_src>

<mosaic_0001>
module attributes {stable_mosaic.version = 11 : i64} {
  func.func @_gap_single_kernel(%arg0: i32, %arg1: memref<8x256xf32, #tpu.memory_space<vmem>>, %arg2: memref<8x1xf32, #tpu.memory_space<vmem>>) attributes {dimension_semantics = [#tpu.dimension_semantics<parallel>], iteration_bounds = array<i64: 1>, scalar_prefetch = 0 : i64, scratch_operands = 0 : i64, tpu.core_type = #tpu.core_type<tc>, window_params = [{transform_indices = @transform_0, window_bounds = array<i64: 8, 256>}, {transform_indices = @transform_1, window_bounds = array<i64: 8, 1>}]} {
    %c0 = arith.constant 0 : index
    %c0_0 = arith.constant 0 : index
    %0 = vector.load %arg1[%c0, %c0_0] : memref<8x256xf32, #tpu.memory_space<vmem>>, vector<8x256xf32>
    %cst = arith.constant dense<0.000000e+00> : vector<8xf32>
    %1 = vector.multi_reduction <add>, %0, %cst [1] : vector<8x256xf32> to vector<8xf32>
    %2 = vector.shape_cast %1 : vector<8xf32> to vector<8x1xf32>
    %cst_1 = arith.constant 3.906250e-03 : f32
    %3 = vector.broadcast %cst_1 : f32 to vector<8x1xf32>
    %4 = arith.mulf %2, %3 : vector<8x1xf32>
    %c0_2 = arith.constant 0 : index
    %c0_3 = arith.constant 0 : index
    %5 = vector.load %arg2[%c0_2, %c0_3] : memref<8x1xf32, #tpu.memory_space<vmem>>, vector<8x1xf32>
    tpu.vector_store %arg2[%c0_2, %c0_3], %4 {strides = array<i32>} : memref<8x1xf32, #tpu.memory_space<vmem>>, vector<8x1xf32>,
    return
  }
  func.func @transform_0(%arg0: i32) -> (i32, i32) {
    %c0_i32 = arith.constant 0 : i32
    %c0_i32_0 = arith.constant 0 : i32
    return %arg0, %c0_i32 : i32, i32
  }
  func.func @transform_1(%arg0: i32) -> (i32, i32) {
    %c0_i32 = arith.constant 0 : i32
    %c0_i32_0 = arith.constant 0 : i32
    return %arg0, %c0_i32 : i32, i32
  }
}

</mosaic_0001>

<bundles_post_ra>
// kernel: tpu_custom_call.1
= control target key start
LH: loop header
LB: loop body
LE: loop exit
PB: predicated region body
PF: predicated region fallthrough
CT: control target
= control target key end

     0   :  { %6 = vsyncpa [#allocation3], 0  ;;  %s58_s6 = smov [#allocation2]   ;;  %s84_s0 = inlined_call_operand.hbm [shape: f32[8,256], index: 0, kind: input, shape index: {}]   ;;  %s85_s1 = inlined_call_operand.vmem [shape: f32[8,1], index: 1, kind: output, shape index: {}]  }
   0x1   :  { %s13_s7 = sshll.u32 %s58_s6, 4  ;;  %s34_s10 = scalar_lea.hbm %s84_s0, 256  ;;  %s14_s7 = int_to_ptr.vmem [resolvable:$true] %s13_s7 }
   0x2   :  { %p35_p0 = scmp.ne.s32.totalorder %s84_s0, %s34_s10  ;;  %p38_p1 = scmp.lt.u32.totalorder %s34_s10, %s84_s0 }
   0x4   :  { %p40_p2 = pnand %p38_p1, %p35_p0 }
   0x6   :  { %43 = shalt.err (!%p40_p2)
}
   0x7   :  { %s44_s15 = scalar_lea.vmem %s14_s7, 256  ;;  %p49_p4 = scmp.lt.s32.totalorder %s14_s7, %s14_s7 }
   0x8   :  { %p45_p3 = scmp.ne.s32.totalorder %s14_s7, %s44_s15  ;;  %p50_p5 = scmp.lt.s32.totalorder %s44_s15, %s44_s15 }
   0xa   :  { %p51_p6 = por %p50_p5, %p49_p4 }
   0xc   :  { %p52_p7 = pnand %p51_p6, %p45_p3 }
   0xe   :  { %55 = shalt.err (!%p52_p7)
}
   0xf   :  { %16 = dma.hbm_to_vmem [thread:$0]  %s84_s0, 256, %s14_s7, [#allocation3]  }
  0x10   :  { %56 = dma.done.wait [#allocation3], 256  }
  0x11   :  { %57 = vsyncadd [#allocation3], 4294967040  ;;  %v20_v0 = vld [vmem:[#allocation2] sm:$0xff]  ;;  %v21_v1 = vld [vmem:[#allocation2 + $0x8] sm:$0xff]  ;;  %vm26_vm0 = vcmask 7168  }
  0x12   :  { %v22_v2 = vadd.f32 %v21_v1, %v20_v0 }
  0x14   :  { %23 = vadd.xlane.f32.xlu0 %v22_v2 }
  0xa1   :  { %v24_v3 = vpop.xlane.xlu0 %23 }
  0xa2   :  { %v25_v4 = vmul.f32 0.00390625, %v24_v3 }
  0xa4   :  { %27 = vst.msk [vmem:[%s85_s1] sm:$0xff] %vm26_vm0, %v25_v4 }
  0xa5   :  { %32 = vsyncpa [#allocation3], 1 }

</bundles_post_ra>
